<compile_context>
chip_gen: v7x
topology: tpu7x:2x2x1
jax: 0.10.0
libtpu: 0.0.40
codegen_flags: <defaults>
</compile_context>

<pallas_src>
from itertools import accumulate
from typing import List, Tuple

import jax
import jax.numpy as jnp
from jax.experimental import pallas as pl
from jax.experimental.pallas import tpu as pltpu

_MiB = 1024 * 1024


def _round_down(x: int, m: int) -> int:
    return (x // m) * m


def _round_up(x: int, m: int) -> int:
    return ((x + m - 1) // m) * m


def _sublane(itemsize: int) -> int:
    # 8 sublanes of 32-bit; sub-32-bit dtypes pack along sublanes.
    return max(8, 32 // max(1, itemsize))


def _chip_budgets() -> Tuple[int, int, int]:
    """Returns (pipeline_budget_bytes, vmem_limit_bytes, parallel_tensorcores)."""
    # Conservative defaults, safe on every generation.
    pipeline, limit, cores = 24 * _MiB, 48 * _MiB, 1
    kind = ""
    try:
        kind = jax.devices()[0].device_kind.lower()
    except Exception:
        pass
    is_v7 = ("v7" in kind) or ("tpu7" in kind)
    vmem_cap = None
    try:
        vmem_cap = int(pltpu.get_tpu_info().vmem_capacity_bytes)
    except Exception:
        vmem_cap = None
    if is_v7:
        # 64 MiB VMEM per TensorCore, ~3.2 TB/s HBM, 2 TCs: bigger blocks under
        # a tighter scoped limit; shard the parallel grid axis across 2 cores.
        pipeline, limit, cores = 32 * _MiB, 48 * _MiB, 2
    elif vmem_cap is not None and vmem_cap >= 100 * _MiB:
        # v5e / v6e class: 128 MiB physical VMEM -> larger pipeline budget.
        pipeline, limit = 56 * _MiB, 96 * _MiB
    return pipeline, limit, cores


def _pick_batch_tile(B: int, D: int, itemsize: int,
                     pipeline_budget_bytes: int, num_cores: int) -> int:
    """VMEM-budget-driven, balanced, sublane-aligned batch tile."""
    sub = _sublane(itemsize)
    if B <= sub:
        return B                      # single block equal to the full batch dim
    row_bytes = max(1, D * itemsize)
    # ~4 pipelined buffers (2 in + 2 out double buffers) share the budget.
    max_rows = max(sub, _round_down(pipeline_budget_bytes // 4 // row_bytes, sub))
    max_rows = min(max_rows, max(sub, _round_down(B, sub)))
    nsteps = pl.cdiv(B, max_rows)
    # On multi-TC chips prefer a step count divisible by the core count so the
    # "parallel" grid axis shards evenly (no forced split on single-TC chips).
    if num_cores > 1 and nsteps % num_cores != 0 and B >= 2 * sub * num_cores:
        nsteps = _round_up(nsteps, num_cores)
    # Balanced tiles: equal-ish sizes instead of full tiles + a tiny ragged tail.
    tb = max(sub, _round_up(pl.cdiv(B, nsteps), sub))
    return min(tb, max_rows)


def _coalesced_copies(embs_dims: List[int],
                      permute: List[int]) -> List[Tuple[int, int, int]]:
    """Static (dst, src, length) copies with contiguous source runs merged."""
    offsets = [0] + list(accumulate(embs_dims))
    copies: List[Tuple[int, int, int]] = []
    dst = 0
    for p in permute:
        src, length = offsets[p], embs_dims[p]
        if copies and copies[-1][1] + copies[-1][2] == src:
            d0, s0, l0 = copies[-1]
            copies[-1] = (d0, s0, l0 + length)
        else:
            copies.append((dst, src, length))
        dst += length
    return copies


def _make_lane_dense_kernel(copies: List[Tuple[int, int, int]]):
    """Assemble the whole permuted row block, then one dense full-width store."""
    def kernel(x_ref, o_ref):
        x = x_ref[...]
        pieces = [x[:, s:s + l] for (_, s, l) in copies]
        if len(pieces) > 1:
            o_ref[...] = jnp.concatenate(pieces, axis=-1)
        else:
            o_ref[...] = pieces[0]
    return kernel


def _make_sliced_store_kernel(copies: List[Tuple[int, int, int]]):
    """Fallback: per-segment slice copies (proven path, masked partial stores)."""
    def kernel(x_ref, o_ref):
        for d, s, l in copies:
            o_ref[:, d:d + l] = x_ref[:, s:s + l]
    return kernel


_LANE_DENSE_SUPPORTED = None


def _lane_dense_supported() -> bool:
    """One-time probe: unaligned minor-dim concat inside a Pallas TPU kernel."""
    global _LANE_DENSE_SUPPORTED
    if _LANE_DENSE_SUPPORTED is None:
        def probe(x_ref, o_ref):
            x = x_ref[...]
            o_ref[...] = jnp.concatenate(
                [x[:, 24:80], x[:, 8:24], x[:, 0:8]], axis=-1)
        try:
            x = jnp.arange(8 * 80, dtype=jnp.float32).reshape(8, 80)
            out = pl.pallas_call(
                probe, out_shape=jax.ShapeDtypeStruct((8, 80), jnp.float32))(x)
            out = jax.block_until_ready(out)
            ref = jnp.concatenate([x[:, 24:80], x[:, 8:24], x[:, 0:8]], axis=-1)
            _LANE_DENSE_SUPPORTED = bool(jnp.array_equal(out, ref))
        except Exception:
            _LANE_DENSE_SUPPORTED = False
    return _LANE_DENSE_SUPPORTED


class PermutePooledEmbeddingsSplit:
    """JAX/Pallas equivalent of fbgemm_gpu PermutePooledEmbeddingsSplit (forward)."""

    def __init__(self, embs_dims: List[int], permute: List[int]):
        self._embs_dims = list(embs_dims)
        self._permute = list(permute)
        self._total_dim = sum(embs_dims)

        # Buffers kept for parity with the PyTorch module (int32: without
        # jax_enable_x64 an int64 request silently downcasts anyway).  Unused at
        # runtime because the permutation is static.
        self._offset_dim_list = jnp.asarray(
            [0] + list(accumulate(embs_dims)), dtype=jnp.int32)
        inv_permute = [0] * len(permute)
        for i, p in enumerate(permute):
            inv_permute[p] = i
        self._inv_permute = jnp.asarray(inv_permute, dtype=jnp.int32)
        inv_embs_dims = [embs_dims[i] for i in permute]
        self._inv_offset_dim_list = jnp.asarray(
            [0] + list(accumulate(inv_embs_dims)), dtype=jnp.int32)

        self._copies = _coalesced_copies(self._embs_dims, self._permute)
        # A single coalesced copy necessarily spans the full width from column 0
        # -> identity permutation.
        self._is_identity = len(self._copies) == 1
        if self._is_identity:
            self._kernel = None
        elif _lane_dense_supported():
            self._kernel = _make_lane_dense_kernel(self._copies)
        else:
            self._kernel = _make_sliced_store_kernel(self._copies)

    def __call__(self, pooled_embs: jnp.ndarray) -> jnp.ndarray:
        B, D = pooled_embs.shape
        assert D == self._total_dim, "feature dim mismatch"
        if self._is_identity:
            # No-op permutation: skip the kernel launch and HBM round trip.
            return pooled_embs

        itemsize = jnp.dtype(pooled_embs.dtype).itemsize
        pipeline, vmem_limit, cores = _chip_budgets()
        tb = _pick_batch_tile(B, D, itemsize, pipeline, cores)
        grid = (pl.cdiv(B, tb),)

        cost = pl.CostEstimate(
            flops=0, transcendentals=0, bytes_accessed=2 * B * D * itemsize)

        # Note: input_output_aliases={0: 0} could reuse the input's HBM buffer
        # if the caller donates it; omitted to avoid a silent copy otherwise.
        return pl.pallas_call(
            self._kernel,
            out_shape=jax.ShapeDtypeStruct((B, D), pooled_embs.dtype),
            grid_spec=pltpu.PrefetchScalarGridSpec(
                num_scalar_prefetch=0,
                grid=grid,
                # Full feature dim in one block (block last dim == array last
                # dim); batch-tile rows on the sublane axis.
                in_specs=[pl.BlockSpec((tb, D), lambda i: (i, 0))],
                out_specs=pl.BlockSpec((tb, D), lambda i: (i, 0)),
            ),
            compiler_params=pltpu.CompilerParams(
                dimension_semantics=("parallel",),
                vmem_limit_bytes=vmem_limit,
            ),
            cost_estimate=cost,
        )(pooled_embs)


def _reference(pooled_embs, embs_dims, permute):
    offsets = [0] + list(accumulate(embs_dims))
    segs = [pooled_embs[:, offsets[p]:offsets[p] + embs_dims[p]] for p in permute]
    return jnp.concatenate(segs, axis=1)


if __name__ == "__main__":
    key = jax.random.PRNGKey(0)

    # Case 1: batch divisible by sublane count, non-coalescable permute.
    embs_dims_1 = [16, 32, 8, 24]          # total_dim = 80
    permute_1 = [2, 0, 3, 1]
    key, k1 = jax.random.split(key)
    x1 = jax.random.normal(k1, (8, sum(embs_dims_1)), dtype=jnp.float32)
    mod1 = PermutePooledEmbeddingsSplit(embs_dims_1, permute_1)
    out1 = jax.block_until_ready(mod1(x1))
    ref1 = _reference(x1, embs_dims_1, permute_1)
    assert out1.shape == ref1.shape and out1.dtype == ref1.dtype
    assert jnp.allclose(out1, ref1), "mismatch (case 1)"

    # Case 2: ragged batch (partial last block) + coalescable permute
    # ([2,3] and [0,1] merge into two wide copies).
    embs_dims_2 = [16, 32, 8, 24]
    permute_2 = [2, 3, 0, 1]
    key, k2 = jax.random.split(key)
    x2 = jax.random.normal(k2, (12, sum(embs_dims_2)), dtype=jnp.float32)
    mod2 = PermutePooledEmbeddingsSplit(embs_dims_2, permute_2)
    assert len(mod2._copies) == 2, "coalescing failed"
    out2 = jax.block_until_ready(mod2(x2))
    ref2 = _reference(x2, embs_dims_2, permute_2)
    assert out2.shape == ref2.shape and out2.dtype == ref2.dtype
    assert jnp.allclose(out2, ref2), "mismatch (case 2)"

    # Case 3: identity permutation -> short-circuit, no kernel launch.
    embs_dims_3 = [16, 32, 8, 24]
    permute_3 = [0, 1, 2, 3]
    key, k3 = jax.random.split(key)
    x3 = jax.random.normal(k3, (8, sum(embs_dims_3)), dtype=jnp.float32)
    mod3 = PermutePooledEmbeddingsSplit(embs_dims_3, permute_3)
    assert mod3._is_identity
    out3 = jax.block_until_ready(mod3(x3))
    ref3 = _reference(x3, embs_dims_3, permute_3)
    assert out3.shape == ref3.shape and out3.dtype == ref3.dtype
    assert jnp.allclose(out3, ref3), "mismatch (case 3)"

    # Case 4: batch smaller than the sublane count (full-batch single block).
    embs_dims_4 = [16, 32, 8, 24]
    permute_4 = [1, 0, 3, 2]
    key, k4 = jax.random.split(key)
    x4 = jax.random.normal(k4, (5, sum(embs_dims_4)), dtype=jnp.float32)
    mod4 = PermutePooledEmbeddingsSplit(embs_dims_4, permute_4)
    out4 = jax.block_until_ready(mod4(x4))
    ref4 = _reference(x4, embs_dims_4, permute_4)
    assert out4.shape == ref4.shape and out4.dtype == ref4.dtype
    assert jnp.allclose(out4, ref4), "mismatch (case 4)"

    print("KERNEL_OK")
</pallas_src>

<mosaic_0001>
module attributes {stable_mosaic.version = 11 : i64} {
  func.func @probe(%arg0: memref<8x80xf32, #tpu.memory_space<vmem>>, %arg1: memref<8x80xf32, #tpu.memory_space<vmem>>) attributes {dimension_semantics = [], scalar_prefetch = 0 : i64, scratch_operands = 0 : i64, tpu.core_type = #tpu.core_type<tc>} {
    %c0 = arith.constant 0 : index
    %c0_0 = arith.constant 0 : index
    %0 = vector.load %arg0[%c0, %c0_0] : memref<8x80xf32, #tpu.memory_space<vmem>>, vector<8x80xf32>
    %1 = vector.extract_strided_slice %0 {offsets = [0, 24], sizes = [8, 56], strides = [1, 1]} : vector<8x80xf32> to vector<8x56xf32>
    %2 = vector.extract_strided_slice %0 {offsets = [0, 8], sizes = [8, 16], strides = [1, 1]} : vector<8x80xf32> to vector<8x16xf32>
    %3 = vector.extract_strided_slice %0 {offsets = [0, 0], sizes = [8, 8], strides = [1, 1]} : vector<8x80xf32> to vector<8x8xf32>
    %4 = tpu.concatenate %1, %2, %3 in 1 : vector<8x56xf32>, vector<8x16xf32>, vector<8x8xf32> -> vector<8x80xf32>
    %c0_1 = arith.constant 0 : index
    %c0_2 = arith.constant 0 : index
    %5 = vector.load %arg1[%c0_1, %c0_2] : memref<8x80xf32, #tpu.memory_space<vmem>>, vector<8x80xf32>
    tpu.vector_store %arg1[%c0_1, %c0_2], %4 {strides = array<i32>} : memref<8x80xf32, #tpu.memory_space<vmem>>, vector<8x80xf32>,
    return
  }
}

module attributes {stable_mosaic.version = 11 : i64} {
  func.func @kernel(%arg0: i32, %arg1: memref<8x80xf32, #tpu.memory_space<vmem>>, %arg2: memref<8x80xf32, #tpu.memory_space<vmem>>) attributes {dimension_semantics = [#tpu.dimension_semantics<parallel>], iteration_bounds = array<i64: 1>, scalar_prefetch = 0 : i64, scratch_operands = 0 : i64, tpu.core_type = #tpu.core_type<tc>, window_params = [{transform_indices = @transform_0, window_bounds = array<i64: 8, 80>}, {transform_indices = @transform_1, window_bounds = array<i64: 8, 80>}]} {
    %c0 = arith.constant 0 : index
    %c48 = arith.constant 48 : index
    %0 = vector.load %arg1[%c0, %c48] : memref<8x80xf32, #tpu.memory_space<vmem>>, vector<8x8xf32>
    %c0_0 = arith.constant 0 : index
    %c0_1 = arith.constant 0 : index
    %1 = vector.load %arg2[%c0_0, %c0_1] : memref<8x80xf32, #tpu.memory_space<vmem>>, vector<8x8xf32>
    tpu.vector_store %arg2[%c0_0, %c0_1], %0 {strides = array<i32>} : memref<8x80xf32, #tpu.memory_space<vmem>>, vector<8x8xf32>,
    %c0_2 = arith.constant 0 : index
    %c0_3 = arith.constant 0 : index
    %2 = vector.load %arg1[%c0_2, %c0_3] : memref<8x80xf32, #tpu.memory_space<vmem>>, vector<8x16xf32>
    %c0_4 = arith.constant 0 : index
    %c8 = arith.constant 8 : index
    %3 = vector.load %arg2[%c0_4, %c8] : memref<8x80xf32, #tpu.memory_space<vmem>>, vector<8x16xf32>
    tpu.vector_store %arg2[%c0_4, %c8], %2 {strides = array<i32>} : memref<8x80xf32, #tpu.memory_space<vmem>>, vector<8x16xf32>,
    %c0_5 = arith.constant 0 : index
    %c56 = arith.constant 56 : index
    %4 = vector.load %arg1[%c0_5, %c56] : memref<8x80xf32, #tpu.memory_space<vmem>>, vector<8x24xf32>
    %c0_6 = arith.constant 0 : index
    %c24 = arith.constant 24 : index
    %5 = vector.load %arg2[%c0_6, %c24] : memref<8x80xf32, #tpu.memory_space<vmem>>, vector<8x24xf32>
    tpu.vector_store %arg2[%c0_6, %c24], %4 {strides = array<i32>} : memref<8x80xf32, #tpu.memory_space<vmem>>, vector<8x24xf32>,
    %c0_7 = arith.constant 0 : index
    %c16 = arith.constant 16 : index
    %6 = vector.load %arg1[%c0_7, %c16] : memref<8x80xf32, #tpu.memory_space<vmem>>, vector<8x32xf32>
    %c0_8 = arith.constant 0 : index
    %c48_9 = arith.constant 48 : index
    %7 = vector.load %arg2[%c0_8, %c48_9] : memref<8x80xf32, #tpu.memory_space<vmem>>, vector<8x32xf32>
    tpu.vector_store %arg2[%c0_8, %c48_9], %6 {strides = array<i32>} : memref<8x80xf32, #tpu.memory_space<vmem>>, vector<8x32xf32>,
    return
  }
  func.func @transform_0(%arg0: i32) -> (i32, i32) {
    %c0_i32 = arith.constant 0 : i32
    %c0_i32_0 = arith.constant 0 : i32
    return %arg0, %c0_i32 : i32, i32
  }
  func.func @transform_1(%arg0: i32) -> (i32, i32) {
    %c0_i32 = arith.constant 0 : i32
    %c0_i32_0 = arith.constant 0 : i32
    return %arg0, %c0_i32 : i32, i32
  }
}

</mosaic_0001>

<bundles_post_ra>
// kernel: tpu_custom_call.1
= control target key start
LH: loop header
LB: loop body
LE: loop exit
PB: predicated region body
PF: predicated region fallthrough
CT: control target
= control target key end

     0   :  { %6 = vsyncpa [#allocation3], 0  ;;  %s145_s0 = inlined_call_operand.hbm [shape: f32[8,80], index: 0, kind: input, shape index: {}]   ;;  %s146_s1 = inlined_call_operand.hbm [shape: f32[8,80], index: 1, kind: output, shape index: {}]  }
   0x1   :  { %7 = vsyncpa [#allocation4], 0  ;;  %s106_s6 = smov [#allocation2]   ;;  %s58_s10 = scalar_lea.hbm %s145_s0, 128 }
   0x2   :  { %s14_s7 = sshll.u32 %s106_s6, 4  ;;  %p59_p0 = scmp.ne.s32.totalorder %s145_s0, %s58_s10  ;;  %s15_s7 = int_to_ptr.vmem [resolvable:$true] %s14_s7 }
   0x3   :  { %p62_p1 = scmp.lt.u32.totalorder %s58_s10, %s145_s0 }
   0x5   :  { %p64_p2 = pnand %p62_p1, %p59_p0 }
   0x7   :  { %67 = shalt.err (!%p64_p2)
}
   0x8   :  { %s68_s15 = scalar_lea.vmem %s15_s7, 128  ;;  %p73_p4 = scmp.lt.s32.totalorder %s15_s7, %s15_s7 }
   0x9   :  { %p69_p3 = scmp.ne.s32.totalorder %s15_s7, %s68_s15  ;;  %p74_p5 = scmp.lt.s32.totalorder %s68_s15, %s68_s15 }
   0xb   :  { %p75_p6 = por %p74_p5, %p73_p4 }
   0xd   :  { %p76_p7 = pnand %p75_p6, %p69_p3 }
   0xf   :  { %79 = shalt.err (!%p76_p7)
}
  0x10   :  { %17 = dma.hbm_to_vmem [thread:$0]  %s145_s0, 128, %s15_s7, [#allocation3]  }
  0x11   :  { %102 = dma.done.wait [#allocation3], 128  }
  0x12   :  { %103 = vsyncadd [#allocation3], 4294967168  ;;  %v21_v0 = vld [vmem:[#allocation2] sm:$0xff]  ;;  %s107_s18 = smov 104   ;;  %s108_s19 = smov 72   ;;  %vm32_vm0 = vcmask 457728  }
  0x13   :  { %23 = vrot.lane.b32.xlu0 %v21_v0, %s107_s18  ;;  %29 = vrot.lane.b32.xlu1 %v21_v0, %s108_s19  ;;  %s109_s20 = smov 48   ;;  %s110_s21 = smov [#allocation5]   ;;  %vm34_vm1 = vcmask 588800   ;;  %vm36_vm2 = vcmask 654336  }
  0x14   :  { %s44_s22 = sshll.u32 %s110_s21, 4  ;;  %s45_s22 = int_to_ptr.vmem [resolvable:$true] %s44_s22 }
  0x15   :  { %s80_s0 = scalar_lea.vmem %s45_s22, 128  ;;  %p85_p9 = scmp.lt.s32.totalorder %s45_s22, %s45_s22 }
  0x16   :  { %p81_p8 = scmp.ne.s32.totalorder %s45_s22, %s80_s0  ;;  %p86_p10 = scmp.lt.s32.totalorder %s80_s0, %s80_s0 }
  0x17   :  { %26 = vrot.lane.b32.xlu0 %v21_v0, %s109_s20 }
  0x18   :  { %p87_p11 = por %p86_p10, %p85_p9 }
  0x1a   :  { %p88_p12 = pnand %p87_p11, %p81_p8 }
  0x85   :  { %v24_v1 = vpop.permute.xlu0 %23  ;;  %v30_v2 = vpop.permute.xlu1 %29 }
  0x89   :  { %v27_v3 = vpop.permute.xlu0 %26 }
  0x8a   :  { %v33_v4 = vsel %vm32_vm0, %v24_v1, %v27_v3 }
  0x8b   :  { %v35_v5 = vsel %vm34_vm1, %v33_v4, %v30_v2 }
  0x8c   :  { %37 = vst.msk [vmem:[#allocation5] sm:$0xff] %vm36_vm2, %v35_v5 }
  0x8d   :  { %91 = shalt.err (!%p88_p12)
}
  0x8e   :  { %s92_s25 = scalar_lea.hbm %s146_s1, 128 }
  0x8f   :  { %p93_p13 = scmp.ne.s32.totalorder %s146_s1, %s92_s25  ;;  %p96_p0 = scmp.lt.u32.totalorder %s92_s25, %s146_s1 }
  0x91   :  { %p98_p1 = pnand %p96_p0, %p93_p13 }
  0x93   :  { %101 = shalt.err (!%p98_p1)
}
  0x94   :  { %47 = dma.vmem_to_hbm [thread:$0]  %s45_s22, 128, %s146_s1, [#allocation4]  }
  0x95   :  { %104 = dma.done.wait [#allocation4], 128  }
  0x96   :  { %105 = vsyncadd [#allocation4], 4294967168 }
  0x97   :  { %51 = vsyncpa [#allocation3], 1 }
  0x98   :  { %52 = vsyncpa [#allocation4], 1 }

// kernel: tpu_custom_call.1
= control target key start
LH: loop header
LB: loop body
LE: loop exit
PB: predicated region body
PF: predicated region fallthrough
CT: control target
= control target key end

     0   :  { %6 = vsyncpa [#allocation3], 0  ;;  %s158_s0 = inlined_call_operand.hbm [shape: f32[8,80], index: 0, kind: input, shape index: {}]   ;;  %s159_s1 = inlined_call_operand.hbm [shape: f32[8,80], index: 1, kind: output, shape index: {}]  }
   0x1   :  { %7 = vsyncpa [#allocation4], 0  ;;  %s118_s6 = smov [#allocation2]   ;;  %s70_s10 = scalar_lea.hbm %s158_s0, 128 }
   0x2   :  { %s14_s7 = sshll.u32 %s118_s6, 4  ;;  %p71_p0 = scmp.ne.s32.totalorder %s158_s0, %s70_s10  ;;  %s15_s7 = int_to_ptr.vmem [resolvable:$true] %s14_s7 }
   0x3   :  { %p74_p1 = scmp.lt.u32.totalorder %s70_s10, %s158_s0 }
   0x5   :  { %p76_p2 = pnand %p74_p1, %p71_p0 }
   0x7   :  { %79 = shalt.err (!%p76_p2)
}
   0x8   :  { %s80_s15 = scalar_lea.vmem %s15_s7, 128  ;;  %p85_p4 = scmp.lt.s32.totalorder %s15_s7, %s15_s7 }
   0x9   :  { %p81_p3 = scmp.ne.s32.totalorder %s15_s7, %s80_s15  ;;  %p86_p5 = scmp.lt.s32.totalorder %s80_s15, %s80_s15 }
   0xb   :  { %p87_p6 = por %p86_p5, %p85_p4 }
   0xd   :  { %p88_p7 = pnand %p87_p6, %p81_p3 }
   0xf   :  { %91 = shalt.err (!%p88_p7)
}
  0x10   :  { %17 = dma.hbm_to_vmem [thread:$0]  %s158_s0, 128, %s15_s7, [#allocation3]  }
  0x11   :  { %114 = dma.done.wait [#allocation3], 128  }
  0x12   :  { %115 = vsyncadd [#allocation3], 4294967168  ;;  %v21_v0 = vld [vmem:[#allocation2] sm:$0xff]  ;;  %s119_s18 = smov 80   ;;  %s120_s19 = smov 96   ;;  %vm26_vm0 = vcmask 64512  }
  0x13   :  { %23 = vrot.lane.b32.xlu0 %v21_v0, %s119_s18  ;;  %37 = vrot.lane.b32.xlu1 %v21_v0, %s120_s19  ;;  %s121_s20 = smov 8   ;;  %s122_s21 = smov 32   ;;  %vm33_vm1 = vcmask 195648   ;;  %vm40_vm2 = vcmask 392384   ;;  %vm47_vm3 = vcmask 654720  }
  0x14   :  { %s123_s22 = smov [#allocation5]  }
  0x15   :  { %s55_s23 = sshll.u32 %s123_s22, 4  ;;  %s56_s23 = int_to_ptr.vmem [resolvable:$true] %s55_s23 }
  0x16   :  { %s92_s0 = scalar_lea.vmem %s56_s23, 128  ;;  %p97_p9 = scmp.lt.s32.totalorder %s56_s23, %s56_s23 }
  0x17   :  { %30 = vrot.lane.b32.xlu0 %v21_v0, %s121_s20  ;;  %44 = vrot.lane.b32.xlu1 %v21_v0, %s122_s21  ;;  %p93_p8 = scmp.ne.s32.totalorder %s56_s23, %s92_s0  ;;  %p98_p10 = scmp.lt.s32.totalorder %s92_s0, %s92_s0 }
  0x19   :  { %p99_p11 = por %p98_p10, %p97_p9 }
  0x1b   :  { %p100_p12 = pnand %p99_p11, %p93_p8 }
  0x85   :  { %v24_v1 = vpop.permute.xlu0 %23  ;;  %v38_v2 = vpop.permute.xlu1 %37 }
  0x86   :  { %27 = vst.msk [vmem:[#allocation5] sm:$0xff] %vm26_vm0, %v24_v1 }
  0x89   :  { %v31_v3 = vpop.permute.xlu0 %30  ;;  %v45_v4 = vpop.permute.xlu1 %44 }
  0x8a   :  { %34 = vst.msk [vmem:[#allocation5] sm:$0xff] %vm33_vm1, %v31_v3 }
  0x8b   :  { %41 = vst.msk [vmem:[#allocation5] sm:$0xff] %vm40_vm2, %v38_v2 }
  0x8c   :  { %48 = vst.msk [vmem:[#allocation5] sm:$0xff] %vm47_vm3, %v45_v4 }
  0x8d   :  { %103 = shalt.err (!%p100_p12)
}
  0x8e   :  { %s104_s26 = scalar_lea.hbm %s159_s1, 128 }
  0x8f   :  { %p105_p13 = scmp.ne.s32.totalorder %s159_s1, %s104_s26  ;;  %p108_p0 = scmp.lt.u32.totalorder %s104_s26, %s159_s1 }
  0x91   :  { %p110_p1 = pnand %p108_p0, %p105_p13 }
  0x93   :  { %113 = shalt.err (!%p110_p1)
}
  0x94   :  { %58 = dma.vmem_to_hbm [thread:$0]  %s56_s23, 128, %s159_s1, [#allocation4]  }
  0x95   :  { %116 = dma.done.wait [#allocation4], 128  }
  0x96   :  { %117 = vsyncadd [#allocation4], 4294967168 }
  0x97   :  { %62 = vsyncpa [#allocation3], 1 }
  0x98   :  { %63 = vsyncpa [#allocation4], 1 }

</bundles_post_ra>
